<compile_context>
chip_gen: v5e
topology: v5e:2x2
jax: 0.10.0
libtpu: 0.0.40
codegen_flags: <defaults>
</compile_context>

<pallas_src>
import jax
import jax.numpy as jnp
from jax.experimental import pallas as pl
from jax.experimental.pallas import tpu as pltpu

EPS = 1e-8


# ----------------------------------------------------------------------------
# Pallas kernel: encoder matmul + GroupNorm(1 group) + decoder matmul + OLA
# (one batch*mic sample per grid step)
# ----------------------------------------------------------------------------
def _build_kernel(L, S, E):
    n_inv = 1.0 / float(L * E)

    def kernel(chunks_ref, w_enc_a_ref, w_enc_b_ref, gamma_ref, beta_ref,
               w_dec_ref, feat_ref, out_ref):
        # chunks_ref  : (L+1, S) bf16 non-overlapping half-window chunks
        # w_enc_a/b   : (S, E)   bf16 encoder weight halves (frame l = [chunk l ; chunk l+1])
        # gamma/beta  : (1, E)   f32 GroupNorm affine parameters
        # w_dec_ref   : (E, 2S)  bf16 decoder ConvTranspose1d weight
        # feat_ref    : (L, E)   f32 normalized features (enc_LN output)
        # out_ref     : (L+1, S) f32 overlap-added decoded chunks
        chunks = chunks_ref[...]                       # (L+1, S) bf16
        a = chunks[:-1, :]                             # (L, S) frame first halves
        b = chunks[1:, :]                              # (L, S) frame second halves

        # Encoder Conv1d(1, E, W, stride=S): two plain 2-D bf16 MXU dots with
        # shared weights, f32 accumulation (split-K avoids a lane concat).
        feat = (jnp.dot(a, w_enc_a_ref[...], preferred_element_type=jnp.float32) +
                jnp.dot(b, w_enc_b_ref[...], preferred_element_type=jnp.float32))

        # GroupNorm(1, E): per-sample stats over (L, E), one-pass sum / sumsq.
        s = jnp.sum(jnp.sum(feat, axis=1, keepdims=True), axis=0, keepdims=True)
        ss = jnp.sum(jnp.sum(feat * feat, axis=1, keepdims=True),
                     axis=0, keepdims=True)
        mean = s * n_inv
        var = jnp.maximum(ss * n_inv - mean * mean, 0.0)   # biased variance
        normed = (feat - mean) * jax.lax.rsqrt(var + EPS)
        normed = normed * gamma_ref[...] + beta_ref[...]   # (L, E) f32
        feat_ref[...] = normed

        # Decoder ConvTranspose1d(E, 1, W, stride=S): single fused matmul
        # (L, E) @ (E, 2S) -> (L, 2S), overlap-add via sliced stores.
        dec = jnp.dot(normed.astype(jnp.bfloat16), w_dec_ref[...],
                      preferred_element_type=jnp.float32)  # (L, 2S)
        out_ref[0:1, :] = dec[0:1, :S]
        if L > 1:
            out_ref[1:L, :] = dec[1:, :S] + dec[:-1, S:]
        out_ref[L:L + 1, :] = dec[L - 1:L, S:]

    return kernel


def _tpu_vmem_capacity_bytes():
    try:
        return int(pltpu.get_tpu_info().vmem_capacity_bytes)
    except Exception:
        return 64 * 1024 * 1024   # conservative fallback: v7x per-core physical VMEM


def _enc_norm_dec(chunks_bf16, L, w_enc_a, w_enc_b, gamma, beta, w_dec):
    BM, Lp1, S = chunks_bf16.shape
    W = 2 * S
    E = w_enc_a.shape[1]

    # Honest per-grid-step VMEM estimate: double-buffered in/out blocks plus
    # live intermediates plus (double-buffered) weights.
    per_step = (2 * Lp1 * S * 2            # chunks block (bf16), 2x buffered
                + 2 * Lp1 * S * 4          # out block (f32), 2x buffered
                + 2 * L * E * 4            # feat block (f32), 2x buffered
                + 3 * L * E * 4            # feat / normed / normed_bf16 live values
                + L * W * 4                # dec intermediate
                + 2 * (2 * S * E + E * W) * 2)   # weight buffers (bf16)
    vmem_cap = _tpu_vmem_capacity_bytes()
    vmem_limit = int(min(0.75 * vmem_cap, 96 * 1024 * 1024))
    vmem_limit = max(vmem_limit, min(int(1.25 * per_step), int(0.9 * vmem_cap)))
    # TODO(synk): for very long inputs (single-sample block approaching VMEM
    # capacity, e.g. tens of seconds at 16 kHz) add an L-tiled grid axis with a
    # two-pass GroupNorm (pass 1: encoder + partial sum/sumsq, pass 2:
    # normalize + decoder + OLA) instead of whole-L blocks.

    kernel = _build_kernel(L, S, E)
    feat, out_frames = pl.pallas_call(
        kernel,
        grid=(BM,),
        in_specs=[
            pl.BlockSpec((None, Lp1, S), lambda m: (m, 0, 0)),
            pl.BlockSpec((S, E), lambda m: (0, 0)),
            pl.BlockSpec((S, E), lambda m: (0, 0)),
            pl.BlockSpec((1, E), lambda m: (0, 0)),
            pl.BlockSpec((1, E), lambda m: (0, 0)),
            pl.BlockSpec((E, W), lambda m: (0, 0)),
        ],
        out_specs=[
            pl.BlockSpec((None, L, E), lambda m: (m, 0, 0)),
            pl.BlockSpec((None, Lp1, S), lambda m: (m, 0, 0)),
        ],
        out_shape=[
            jax.ShapeDtypeStruct((BM, L, E), jnp.float32),
            jax.ShapeDtypeStruct((BM, Lp1, S), jnp.float32),
        ],
        compiler_params=pltpu.CompilerParams(
            dimension_semantics=("parallel",),
            vmem_limit_bytes=vmem_limit),
    )(chunks_bf16, w_enc_a, w_enc_b, gamma, beta, w_dec)
    return feat, out_frames


# ----------------------------------------------------------------------------
# JAX glue (shape plumbing, mirrors the PyTorch helper methods exactly)
# ----------------------------------------------------------------------------
def pad_input(x, window, stride):
    """Zero-padding input according to window/stride size (== PyTorch pad_input)."""
    batch_size, nmic, nsample = x.shape
    rest = window - (stride + nsample % window) % window
    if rest > 0:
        x = jnp.concatenate([x, jnp.zeros((batch_size, nmic, rest), x.dtype)], axis=2)
    pad_aux = jnp.zeros((batch_size, nmic, stride), x.dtype)
    x = jnp.concatenate([pad_aux, x, pad_aux], axis=2)
    return x, rest


def signal_context(x, context):
    """Segment signal into chunks with context (== PyTorch signal_context).

    Single pad + one strided gather: all_context[..., j, t] == x_padded[..., t + j].
    TODO(synk): for real shapes this (2*context+1)x HBM materialization should be
    consumed lazily by the downstream kernel via shifted BlockSpec windows.
    """
    batch_size, dim, nframe = x.shape
    xp = jnp.pad(x, ((0, 0), (0, 0), (context, context)))
    idx = jnp.arange(2 * context + 1)[:, None] + jnp.arange(nframe)[None, :]
    return xp[:, :, idx]                                  # (B, dim, 2c+1, L)


class FaSNetBasePallas:
    def __init__(self, enc_dim, feature_dim, hidden_dim, layer, segment_size=24,
                 nspk=2, win_len=16, context_len=16, sr=16000, key=None):
        self.window = int(sr * win_len / 1000)
        self.stride = self.window // 2
        self.context = context_len * 2 // win_len
        self.enc_dim = enc_dim
        self.feature_dim = feature_dim
        self.hidden_dim = hidden_dim
        self.segment_size = segment_size
        self.layer = layer
        self.num_spk = nspk
        self.eps = EPS

        if key is None:
            key = jax.random.PRNGKey(0)
        k_enc, k_dec, k_g, k_b = jax.random.split(key, 4)
        S = self.stride
        # encoder.weight: (enc_dim, 1, window) -> stored as (window, enc_dim)
        self.w_enc = 0.1 * jax.random.normal(k_enc, (self.window, enc_dim), jnp.float32)
        # decoder.weight: (enc_dim, 1, window) -> stored as (enc_dim, window)
        self.w_dec = 0.1 * jax.random.normal(k_dec, (enc_dim, self.window), jnp.float32)
        # bf16 copies for the MXU, cast / split once (not per grid step)
        self.w_enc_a = self.w_enc[:S, :].astype(jnp.bfloat16)
        self.w_enc_b = self.w_enc[S:, :].astype(jnp.bfloat16)
        self.w_dec_bf16 = self.w_dec.astype(jnp.bfloat16)
        # enc_LN (GroupNorm) weight / bias, kept (1, E) for the kernel
        self.gamma = 1.0 + 0.1 * jax.random.normal(k_g, (1, enc_dim), jnp.float32)
        self.beta = 0.1 * jax.random.normal(k_b, (1, enc_dim), jnp.float32)

    def forward(self, input, num_mic):
        # TODO(synk): reference FaSNet_base.forward body is `pass`; this chains the
        # submodules/helpers defined in __init__ (encoder -> enc_LN -> signal_context
        # -> decoder). num_mic is unused (zero == fixed geometry).
        B, M, N = input.shape
        W, S = self.window, self.stride

        x, rest = pad_input(input, W, S)
        Tp = x.shape[-1]
        L = (Tp - W) // S + 1

        # Frame via reshape (no gather): Tp == (L+1)*S; frames are adjacent
        # half-window chunk pairs (50% overlap), rebuilt inside the kernel.
        # bf16 cast once here (the MXU consumed bf16 anyway) => ~half the
        # kernel's input HBM traffic.
        chunks = x.reshape(B * M, L + 1, S).astype(jnp.bfloat16)

        # Hot path: encoder matmul + GroupNorm + decoder matmul + overlap-add.
        feat, out_frames = _enc_norm_dec(chunks, L, self.w_enc_a, self.w_enc_b,
                                         self.gamma, self.beta, self.w_dec_bf16)

        # Context features, in PyTorch NCL layout: (B, M, E, 2*context+1, L)
        feat_ncl = jnp.transpose(feat, (0, 2, 1))
        ctx = signal_context(feat_ncl, self.context)
        ctx = ctx.reshape(B, M, self.enc_dim, 2 * self.context + 1, L)

        # Overlap-add already fused in the kernel; trim the auxiliary padding:
        # equivalent to [:, stride : -(rest + stride)]
        out = out_frames.reshape(B * M, (L + 1) * S)[:, S:S + N].reshape(B, M, N)
        return out, ctx


# ----------------------------------------------------------------------------
# Pure-JAX f32 reference (for a loose numerical sanity check)
# ----------------------------------------------------------------------------
def _reference_forward(model, x):
    B, M, N = x.shape
    W, S = model.window, model.stride
    xp, rest = pad_input(x, W, S)
    Tp = xp.shape[-1]
    L = (Tp - W) // S + 1
    idx = jnp.arange(L)[:, None] * S + jnp.arange(W)[None, :]
    frames = xp.reshape(B * M, Tp)[:, idx]                      # (BM, L, W)
    feat = frames @ model.w_enc                                 # (BM, L, E)
    mean = feat.mean(axis=(1, 2), keepdims=True)
    var = ((feat - mean) ** 2).mean(axis=(1, 2), keepdims=True)
    normed = (feat - mean) / jnp.sqrt(var + EPS)
    normed = normed * model.gamma + model.beta
    ctx = signal_context(jnp.transpose(normed, (0, 2, 1)), model.context)
    ctx = ctx.reshape(B, M, model.enc_dim, 2 * model.context + 1, L)
    dec = normed @ model.w_dec                                  # (BM, L, W)
    a, b = dec[:, :, :S], dec[:, :, S:]
    zero = jnp.zeros((B * M, 1, S), jnp.float32)
    out = (jnp.concatenate([a, zero], axis=1) +
           jnp.concatenate([zero, b], axis=1)).reshape(B * M, (L + 1) * S)
    out = out[:, S:S + N].reshape(B, M, N)
    return out, ctx


if __name__ == "__main__":
    key = jax.random.PRNGKey(0)
    k_param, k_data = jax.random.split(key)

    # Small shapes: sr=1000, win_len=16 -> window=16, stride=8, context=2
    model = FaSNetBasePallas(enc_dim=16, feature_dim=8, hidden_dim=32, layer=2,
                             segment_size=8, nspk=2, win_len=16, context_len=16,
                             sr=1000, key=k_param)

    B, M, T = 2, 4, 64
    x = jax.random.normal(k_data, (B, M, T), jnp.float32)
    num_mic = jnp.zeros((B,), jnp.int32)

    out, ctx = model.forward(x, num_mic)
    jax.block_until_ready(out)
    jax.block_until_ready(ctx)

    assert out.shape == (B, M, T)
    assert ctx.shape == (B, M, 16, 2 * model.context + 1, 10)

    # Loose check vs. pure-JAX f32 reference (kernel uses bf16 MXU matmuls
    # and bf16 chunk inputs).
    out_ref, ctx_ref = _reference_forward(model, x)
    err_out = float(jnp.max(jnp.abs(out - out_ref)))
    err_ctx = float(jnp.max(jnp.abs(ctx - ctx_ref)))
    assert err_out < 1e-1 and err_ctx < 1e-1, (err_out, err_ctx)

    print("KERNEL_OK")
</pallas_src>

<mosaic_0001>
module attributes {stable_mosaic.version = 11 : i64} {
  func.func @kernel(%arg0: i32, %arg1: memref<1x11x8xbf16, #tpu.memory_space<vmem>>, %arg2: memref<8x16xbf16, #tpu.memory_space<vmem>>, %arg3: memref<8x16xbf16, #tpu.memory_space<vmem>>, %arg4: memref<1x16xf32, #tpu.memory_space<vmem>>, %arg5: memref<1x16xf32, #tpu.memory_space<vmem>>, %arg6: memref<16x16xbf16, #tpu.memory_space<vmem>>, %arg7: memref<1x10x16xf32, #tpu.memory_space<vmem>>, %arg8: memref<1x11x8xf32, #tpu.memory_space<vmem>>) attributes {dimension_semantics = [#tpu.dimension_semantics<parallel>], iteration_bounds = array<i64: 8>, scalar_prefetch = 0 : i64, scratch_operands = 0 : i64, tpu.core_type = #tpu.core_type<tc>, window_params = [{transform_indices = @transform_0, window_bounds = array<i64: 1, 11, 8>}, {pipeline_mode = #tpu.pipeline_mode<synchronous>, transform_indices = @transform_1, window_bounds = array<i64: 8, 16>}, {pipeline_mode = #tpu.pipeline_mode<synchronous>, transform_indices = @transform_2, window_bounds = array<i64: 8, 16>}, {pipeline_mode = #tpu.pipeline_mode<synchronous>, transform_indices = @transform_3, window_bounds = array<i64: 1, 16>}, {pipeline_mode = #tpu.pipeline_mode<synchronous>, transform_indices = @transform_4, window_bounds = array<i64: 1, 16>}, {pipeline_mode = #tpu.pipeline_mode<synchronous>, transform_indices = @transform_5, window_bounds = array<i64: 16, 16>}, {transform_indices = @transform_6, window_bounds = array<i64: 1, 10, 16>}, {transform_indices = @transform_7, window_bounds = array<i64: 1, 11, 8>}]} {
    %c0 = arith.constant 0 : index
    %c0_0 = arith.constant 0 : index
    %c0_1 = arith.constant 0 : index
    %0 = vector.load %arg1[%c0, %c0_0, %c0_1] : memref<1x11x8xbf16, #tpu.memory_space<vmem>>, vector<1x11x8xbf16>
    %1 = vector.shape_cast %0 : vector<1x11x8xbf16> to vector<11x8xbf16>
    %2 = vector.extract_strided_slice %1 {offsets = [0, 0], sizes = [10, 8], strides = [1, 1]} : vector<11x8xbf16> to vector<10x8xbf16>
    %3 = vector.extract_strided_slice %1 {offsets = [1, 0], sizes = [10, 8], strides = [1, 1]} : vector<11x8xbf16> to vector<10x8xbf16>
    %c0_2 = arith.constant 0 : index
    %c0_3 = arith.constant 0 : index
    %4 = vector.load %arg2[%c0_2, %c0_3] : memref<8x16xbf16, #tpu.memory_space<vmem>>, vector<8x16xbf16>
    %cst = arith.constant dense<0.000000e+00> : vector<10x16xf32>
    %5 = tpu.matmul %2, %4, %cst {dimension_numbers = #tpu.dot_dimension_numbers<[1], [0], [0], [1], [0, 0, 1, 1], [], []>} : vector<10x8xbf16>, vector<8x16xbf16>, vector<10x16xf32> -> vector<10x16xf32>
    %c0_4 = arith.constant 0 : index
    %c0_5 = arith.constant 0 : index
    %6 = vector.load %arg3[%c0_4, %c0_5] : memref<8x16xbf16, #tpu.memory_space<vmem>>, vector<8x16xbf16>
    %cst_6 = arith.constant dense<0.000000e+00> : vector<10x16xf32>
    %7 = tpu.matmul %3, %6, %cst_6 {dimension_numbers = #tpu.dot_dimension_numbers<[1], [0], [0], [1], [0, 0, 1, 1], [], []>} : vector<10x8xbf16>, vector<8x16xbf16>, vector<10x16xf32> -> vector<10x16xf32>
    %8 = arith.addf %5, %7 : vector<10x16xf32>
    %cst_7 = arith.constant dense<0.000000e+00> : vector<10xf32>
    %9 = vector.multi_reduction <add>, %8, %cst_7 [1] : vector<10x16xf32> to vector<10xf32>
    %10 = vector.shape_cast %9 : vector<10xf32> to vector<10x1xf32>
    %cst_8 = arith.constant dense<0.000000e+00> : vector<1xf32>
    %11 = vector.multi_reduction <add>, %10, %cst_8 [0] : vector<10x1xf32> to vector<1xf32>
    %12 = vector.shape_cast %11 : vector<1xf32> to vector<1x1xf32>
    %13 = arith.mulf %8, %8 : vector<10x16xf32>
    %cst_9 = arith.constant dense<0.000000e+00> : vector<10xf32>
    %14 = vector.multi_reduction <add>, %13, %cst_9 [1] : vector<10x16xf32> to vector<10xf32>
    %15 = vector.shape_cast %14 : vector<10xf32> to vector<10x1xf32>
    %cst_10 = arith.constant dense<0.000000e+00> : vector<1xf32>
    %16 = vector.multi_reduction <add>, %15, %cst_10 [0] : vector<10x1xf32> to vector<1xf32>
    %17 = vector.shape_cast %16 : vector<1xf32> to vector<1x1xf32>
    %cst_11 = arith.constant 6.250000e-03 : f32
    %18 = vector.broadcast %cst_11 : f32 to vector<1x1xf32>
    %19 = arith.mulf %12, %18 : vector<1x1xf32>
    %cst_12 = arith.constant 6.250000e-03 : f32
    %20 = vector.broadcast %cst_12 : f32 to vector<1x1xf32>
    %21 = arith.mulf %17, %20 : vector<1x1xf32>
    %22 = arith.mulf %19, %19 : vector<1x1xf32>
    %23 = arith.subf %21, %22 : vector<1x1xf32>
    %cst_13 = arith.constant 0.000000e+00 : f32
    %24 = vector.broadcast %cst_13 : f32 to vector<1x1xf32>
    %25 = arith.maximumf %23, %24 : vector<1x1xf32>
    %26 = vector.broadcast %19 : vector<1x1xf32> to vector<10x16xf32>
    %27 = arith.subf %8, %26 : vector<10x16xf32>
    %cst_14 = arith.constant 9.99999993E-9 : f32
    %28 = vector.broadcast %cst_14 : f32 to vector<1x1xf32>
    %29 = arith.addf %25, %28 : vector<1x1xf32>
    %30 = math.rsqrt %29 : vector<1x1xf32>
    %31 = vector.broadcast %30 : vector<1x1xf32> to vector<10x16xf32>
    %32 = arith.mulf %27, %31 : vector<10x16xf32>
    %c0_15 = arith.constant 0 : index
    %c0_16 = arith.constant 0 : index
    %33 = vector.load %arg4[%c0_15, %c0_16] : memref<1x16xf32, #tpu.memory_space<vmem>>, vector<1x16xf32>
    %34 = vector.broadcast %33 : vector<1x16xf32> to vector<10x16xf32>
    %35 = arith.mulf %32, %34 : vector<10x16xf32>
    %c0_17 = arith.constant 0 : index
    %c0_18 = arith.constant 0 : index
    %36 = vector.load %arg5[%c0_17, %c0_18] : memref<1x16xf32, #tpu.memory_space<vmem>>, vector<1x16xf32>
    %37 = vector.broadcast %36 : vector<1x16xf32> to vector<10x16xf32>
    %38 = arith.addf %35, %37 : vector<10x16xf32>
    %c0_19 = arith.constant 0 : index
    %c0_20 = arith.constant 0 : index
    %c0_21 = arith.constant 0 : index
    %39 = vector.load %arg7[%c0_19, %c0_20, %c0_21] : memref<1x10x16xf32, #tpu.memory_space<vmem>>, vector<1x10x16xf32>
    %40 = vector.shape_cast %39 : vector<1x10x16xf32> to vector<10x16xf32>
    %41 = vector.shape_cast %38 : vector<10x16xf32> to vector<1x10x16xf32>
    tpu.vector_store %arg7[%c0_19, %c0_20, %c0_21], %41 {strides = array<i32>} : memref<1x10x16xf32, #tpu.memory_space<vmem>>, vector<1x10x16xf32>,
    %42 = arith.truncf %38 : vector<10x16xf32> to vector<10x16xbf16>
    %c0_22 = arith.constant 0 : index
    %c0_23 = arith.constant 0 : index
    %43 = vector.load %arg6[%c0_22, %c0_23] : memref<16x16xbf16, #tpu.memory_space<vmem>>, vector<16x16xbf16>
    %cst_24 = arith.constant dense<0.000000e+00> : vector<10x16xf32>
    %44 = tpu.matmul %42, %43, %cst_24 {dimension_numbers = #tpu.dot_dimension_numbers<[1], [0], [0], [1], [0, 0, 1, 1], [], []>} : vector<10x16xbf16>, vector<16x16xbf16>, vector<10x16xf32> -> vector<10x16xf32>
    %45 = vector.extract_strided_slice %44 {offsets = [0, 0], sizes = [1, 8], strides = [1, 1]} : vector<10x16xf32> to vector<1x8xf32>
    %c0_25 = arith.constant 0 : index
    %c0_26 = arith.constant 0 : index
    %c0_27 = arith.constant 0 : index
    %46 = vector.load %arg8[%c0_25, %c0_26, %c0_27] : memref<1x11x8xf32, #tpu.memory_space<vmem>>, vector<1x1x8xf32>
    %47 = vector.shape_cast %46 : vector<1x1x8xf32> to vector<1x8xf32>
    %48 = vector.shape_cast %45 : vector<1x8xf32> to vector<1x1x8xf32>
    tpu.vector_store %arg8[%c0_25, %c0_26, %c0_27], %48 {strides = array<i32>} : memref<1x11x8xf32, #tpu.memory_space<vmem>>, vector<1x1x8xf32>,
    %49 = vector.extract_strided_slice %44 {offsets = [1, 0], sizes = [9, 8], strides = [1, 1]} : vector<10x16xf32> to vector<9x8xf32>
    %50 = vector.extract_strided_slice %44 {offsets = [0, 8], sizes = [9, 8], strides = [1, 1]} : vector<10x16xf32> to vector<9x8xf32>
    %51 = arith.addf %49, %50 : vector<9x8xf32>
    %c0_28 = arith.constant 0 : index
    %c1 = arith.constant 1 : index
    %c0_29 = arith.constant 0 : index
    %52 = vector.load %arg8[%c0_28, %c1, %c0_29] : memref<1x11x8xf32, #tpu.memory_space<vmem>>, vector<1x9x8xf32>
    %53 = vector.shape_cast %52 : vector<1x9x8xf32> to vector<9x8xf32>
    %54 = vector.shape_cast %51 : vector<9x8xf32> to vector<1x9x8xf32>
    tpu.vector_store %arg8[%c0_28, %c1, %c0_29], %54 {strides = array<i32>} : memref<1x11x8xf32, #tpu.memory_space<vmem>>, vector<1x9x8xf32>,
    %55 = vector.extract_strided_slice %44 {offsets = [9, 8], sizes = [1, 8], strides = [1, 1]} : vector<10x16xf32> to vector<1x8xf32>
    %c0_30 = arith.constant 0 : index
    %c10 = arith.constant 10 : index
    %c0_31 = arith.constant 0 : index
    %56 = vector.load %arg8[%c0_30, %c10, %c0_31] : memref<1x11x8xf32, #tpu.memory_space<vmem>>, vector<1x1x8xf32>
    %57 = vector.shape_cast %56 : vector<1x1x8xf32> to vector<1x8xf32>
    %58 = vector.shape_cast %55 : vector<1x8xf32> to vector<1x1x8xf32>
    tpu.vector_store %arg8[%c0_30, %c10, %c0_31], %58 {strides = array<i32>} : memref<1x11x8xf32, #tpu.memory_space<vmem>>, vector<1x1x8xf32>,
    return
  }
  func.func @transform_0(%arg0: i32) -> (i32, i32, i32) {
    %c0_i32 = arith.constant 0 : i32
    %c0_i32_0 = arith.constant 0 : i32
    %c0_i32_1 = arith.constant 0 : i32
    return %arg0, %c0_i32, %c0_i32_0 : i32, i32, i32
  }
  func.func @transform_1(%arg0: i32) -> (i32, i32) {
    %c0_i32 = arith.constant 0 : i32
    %c0_i32_0 = arith.constant 0 : i32
    %c0_i32_1 = arith.constant 0 : i32
    return %c0_i32, %c0_i32_0 : i32, i32
  }
  func.func @transform_2(%arg0: i32) -> (i32, i32) {
    %c0_i32 = arith.constant 0 : i32
    %c0_i32_0 = arith.constant 0 : i32
    %c0_i32_1 = arith.constant 0 : i32
    return %c0_i32, %c0_i32_0 : i32, i32
  }
  func.func @transform_3(%arg0: i32) -> (i32, i32) {
    %c0_i32 = arith.constant 0 : i32
    %c0_i32_0 = arith.constant 0 : i32
    %c0_i32_1 = arith.constant 0 : i32
    return %c0_i32, %c0_i32_0 : i32, i32
  }
  func.func @transform_4(%arg0: i32) -> (i32, i32) {
    %c0_i32 = arith.constant 0 : i32
    %c0_i32_0 = arith.constant 0 : i32
    %c0_i32_1 = arith.constant 0 : i32
    return %c0_i32, %c0_i32_0 : i32, i32
  }
  func.func @transform_5(%arg0: i32) -> (i32, i32) {
    %c0_i32 = arith.constant 0 : i32
    %c0_i32_0 = arith.constant 0 : i32
    %c0_i32_1 = arith.constant 0 : i32
    return %c0_i32, %c0_i32_0 : i32, i32
  }
  func.func @transform_6(%arg0: i32) -> (i32, i32, i32) {
    %c0_i32 = arith.constant 0 : i32
    %c0_i32_0 = arith.constant 0 : i32
    %c0_i32_1 = arith.constant 0 : i32
    return %arg0, %c0_i32, %c0_i32_0 : i32, i32, i32
  }
  func.func @transform_7(%arg0: i32) -> (i32, i32, i32) {
    %c0_i32 = arith.constant 0 : i32
    %c0_i32_0 = arith.constant 0 : i32
    %c0_i32_1 = arith.constant 0 : i32
    return %arg0, %c0_i32, %c0_i32_0 : i32, i32, i32
  }
}

</mosaic_0001>

<bundles_post_ra>
// kernel: tpu_custom_call.1
= control target key start
LH: loop header
LB: loop body
LE: loop exit
PB: predicated region body
PF: predicated region fallthrough
CT: control target
= control target key end

     0   :  { %s647_s24 = smov 0   ;;  %s693_s0 = inlined_call_operand.vmem [shape: bf16[8,11,8], index: 0, kind: input, shape index: {}]   ;;  %s694_s1 = inlined_call_operand.vmem [shape: bf16[8,16], index: 1, kind: input, shape index: {}]   ;;  %s695_s2 = inlined_call_operand.vmem [shape: bf16[8,16], index: 2, kind: input, shape index: {}]   ;;  %s696_s3 = inlined_call_operand.vmem [shape: f32[1,16], index: 3, kind: input, shape index: {}]   ;;  %s697_s4 = inlined_call_operand.vmem [shape: f32[1,16], index: 4, kind: input, shape index: {}]   ;;  %s698_s5 = inlined_call_operand.vmem [shape: bf16[16,16], index: 5, kind: input, shape index: {}]   ;;  %s699_s6 = inlined_call_operand.vmem [shape: f32[8,10,16], index: 6, kind: output, shape index: {0}]   ;;  %s700_s7 = inlined_call_operand.vmem [shape: f32[8,11,8], index: 7, kind: output, shape index: {1}]  }
   0x1 LB: > { %s556_s25 = sadd.s32 4294967295, %s604_s24   ;;  %p560_p0 = scmp.ge.s32.totalorder %s604_s24, 1  ;;  %s604_s24 = sphi %s647_s24, %s18_s24  }
   0x2   : > { %p240_p1 = scmp.lt.s32.totalorder %s604_s24, 9 }
   0x4   : > { %p241_p2 = pnand %p560_p0, %p240_p1 }
   0x5   : > { %p277_p3 = scmp.lt.s32.totalorder (!%p241_p2), %s556_s25, 7 }
   0x6   : > { %244 = sbr.rel (%p241_p2) target bundleno = 590 (0x24e), region = 44 }
   0xb   : > { %v295_v0 = vld [vmem:[%s694_s1] sm:$0xf]  ;;  %vm313_vm0 = vcmask 1043456   ;;  %s702_s25 = smov (!%p277_p3, %s556_s25), 7  ;;  %vm309_vm1 = vcmask 64512   ;;  %vm354_vm2 = vcmask 123904  }
   0xc   : > { %v334_v1 = vsel %vm313_vm0, %v295_v0, 0  ;;  %v296_v2 = vld [vmem:[%s695_s2] sm:$0xf]  ;;  %s580_s30 = sshll.u32 %s702_s25, 3  ;;  %vm350_vm3 = vcmask 130048   ;;  %vm358_vm4 = vcmask 1041408  }
   0xd   : > { %343 = vmatpush.bf16.msra.mxu1 %v334_v1  ;;  %v315_v3 = vsel %vm313_vm0, %v296_v2, 0  ;;  %s281_s10 = scalar_lea.vmem %s693_s0, %s580_s30  ;;  %v584_v32 = vld [vmem:[%s698_s5] sm:$0xff]  ;;  %s581_s17 = sshll.u32 %s702_s25, 4  ;;  %vm443_vm8 = vcmask 57344   ;;  %vm447_vm9 = vcmask 1040384   ;;  %vm459_vm10 = vcmask 64513  }
   0xe   : > { %324 = vmatpush.bf16.msra.mxu0 %v315_v3  ;;  %v569_v4 = vld [vmem:[%s281_s10] sm:$0xf]  ;;  %v583_v5 = vld [vmem:[%s281_s10] sm:$0x30]  ;;  %436 = vmatpush.bf16.msra.mxu2 %v584_v32  ;;  %s286_s20 = scalar_lea.vmem %s699_s6, %s581_s17  ;;  %s291_s23 = scalar_lea.vmem %s700_s7, %s581_s17  ;;  %vm461_vm11 = vcmask 58368   ;;  %vm466_vm12 = vcmask 58369  }
   0xf   : > { %v570_v6 = vor.u32 %v583_v5, %v569_v4  ;;  %v594_v58 = vld [vmem:[%s696_s3] ss:$0 sm:$0xff]  ;;  %s606_s25 = smov 120  }
  0x10   : > { %v595_v62 = vld [vmem:[%s697_s4] ss:$0 sm:$0xff] }
  0x11   : > { %572 = vmatmul.msk.bf16.vlgmr.msra.gmra.mxu1 %vm309_vm1, %v570_v6  ;;  %v303_v7 = vshrl.u32 %v570_v6, 16  ;;  %v305_v8 = vshll.u32 %v570_v6, 16 }
  0x13   : > { %v307_v9 = vrot.slane %v305_v8, 1 }
  0x15   : > { %v308_v10 = vor.u32 %v307_v9, %v303_v7 }
  0x17   : > { %571 = vmatmul.msk.bf16.vlgmr.msra.gmra.mxu0 %vm309_vm1, %v308_v10 }
  0x8e   : > { %v345_v11 = vpop.f32.mrf.mxu1 }
  0x94   : > { %v326_v12 = vpop.f32.mrf.mxu0 }
  0x95   : > { %v346_v18 = vadd.f32 %v345_v11, %v326_v12 }
  0x96   : > { %v347_v13 = vpop.f32.mrf.mxu1 }
  0x97   : > { %v367_v20 = vmul.f32 %v346_v18, %v346_v18  ;;  %v351_v21 = vsel %vm350_vm3, %v346_v18, 0.0 }
  0x99   : > { %v369_v22 = vsel %vm350_vm3, %v367_v20, 0.0 }
  0x9c   : > { %v328_v14 = vpop.f32.mrf.mxu0 }
  0x9d   : > { %v348_v15 = vadd.f32 %v347_v13, %v328_v14 }
  0x9f   : > { %v355_v16 = vsel %vm354_vm2, %v348_v15, 0.0  ;;  %v368_v17 = vmul.f32 %v348_v15, %v348_v15 }
  0xa0   : > { %356 = vadd.xlane.f32.xlu0 %v355_v16 }
  0xa1   : > { %v372_v19 = vsel %vm354_vm2, %v368_v17, 0.0 }
  0xa2   : > { %373 = vadd.xlane.f32.xlu1 %v372_v19 }
  0xa8   : > { %352 = vadd.xlane.f32.xlu0 %v351_v21 }
  0xaa   : > { %370 = vadd.xlane.f32.xlu1 %v369_v22 }
 0x113   : > { %v357_v23 = vpop.xlane.xlu0 %356 }
 0x114   : > { %v359_v25 = vsel %vm358_vm4, %v357_v23, 0.0 }
 0x115   : > { %v374_v24 = vpop.xlane.xlu1 %373 }
 0x116   : > { %v375_v28 = vsel %vm358_vm4, %v374_v24, 0.0 }
 0x11b   : > { %v353_v26 = vpop.xlane.xlu0 %352 }
 0x11c   : > { %v360_v27 = vadd.f32 %v359_v25, %v353_v26 }
 0x11d   : > { %v371_v29 = vpop.xlane.xlu1 %370 }
 0x11e   : > { %v361_v30 = vrot.slane %v360_v27, 4  ;;  %v376_v31 = vadd.f32 %v375_v28, %v371_v29 }
 0x120   : > { %v362_v33 = vadd.f32 %v361_v30, %v360_v27  ;;  %v377_v34 = vrot.slane %v376_v31, 4 }
 0x122   : > { %v363_v35 = vrot.slane %v362_v33, 2  ;;  %v378_v36 = vadd.f32 %v377_v34, %v376_v31 }
 0x124   : > { %v364_v37 = vadd.f32 %v363_v35, %v362_v33  ;;  %v379_v38 = vrot.slane %v378_v36, 2 }
 0x126   : > { %v365_v39 = vrot.slane %v364_v37, 1  ;;  %v380_v40 = vadd.f32 %v379_v38, %v378_v36 }
 0x128   : > { %v366_v41 = vadd.f32 %v365_v39, %v364_v37  ;;  %v381_v42 = vrot.slane %v380_v40, 1 }
 0x12a   : > { %v383_v43 = vmul.f32 0.00625, %v366_v41  ;;  %v382_v44 = vadd.f32 %v381_v42, %v380_v40 }
 0x12c   : > { %v384_v45 = vmul.f32 0.00625, %v382_v44  ;;  %v385_v46 = vmul.f32 %v383_v43, %v383_v43  ;;  %v388_v56 = vsub.f32 %v346_v18, %v383_v43  ;;  %v389_v57 = vsub.f32 %v348_v15, %v383_v43 }
 0x12e   : > { %v386_v47 = vsub.f32 %v384_v45, %v385_v46 }
 0x130   : > { %v387_v48 = vmax.f32 %v386_v47, 0.0 }
 0x132   : > { %v390_v49 = vadd.f32 1e-08, %v387_v48 }
 0x134   : > { %596 = vrsqrt.f32 %v390_v49  ;;  %vm397_vm6 = vweird.f32 %v390_v49 }
 0x13a   : > { %v597_v50 = vpop.eup %596 }
 0x13b   : > { %v392_v51 = vmul.f32 %v597_v50, %v390_v49  ;;  %vm398_vm5 = vweird.f32 %v597_v50 }
 0x13c   : > { %vm399_vm7 = vmor %vm397_vm6, %vm398_vm5 }
 0x13d   : > { %v393_v52 = vmul.f32 %v597_v50, %v392_v51 }
 0x13f   : > { %v394_v53 = vmul.f32 0.5, %v393_v52 }
 0x141   : > { %v395_v54 = vsub.f32 1.5, %v394_v53 }
 0x143   : > { %v396_v55 = vmul.f32 %v597_v50, %v395_v54 }
 0x145   : > { %v400_v59 = vsel %vm399_vm7, %v597_v50, %v396_v55 }
 0x146   : > { %v401_v60 = vmul.f32 %v400_v59, %v388_v56  ;;  %v402_v61 = vmul.f32 %v400_v59, %v389_v57 }
 0x148   : > { %v407_v63 = vmul.f32 %v594_v58, %v401_v60  ;;  %v408_v0 = vmul.f32 %v594_v58, %v402_v61 }
 0x14a   : > { %v413_v1 = vadd.f32 %v595_v62, %v407_v63  ;;  %v414_v2 = vadd.f32 %v595_v62, %v408_v0 }
 0x14c   : > { %v417_v3 = vpack.c.bf16 %v414_v2, %v413_v1  ;;  %415 = vst.msk [vmem:[%s286_s20] sm:$0xff] %vm350_vm3, %v413_v1 }
 0x14d   : > { %416 = vst.msk [vmem:[%s286_s20 + $0x8] sm:$0x3] %vm354_vm2, %v414_v2 }
 0x14e   : > { %577 = vmatmul.msk.bf16.vlgmr.msra.gmra.mxu2 %vm350_vm3, %v417_v3 }
 0x1d1   : > { %v438_v4 = vpop.f32.mrf.mxu2 }
 0x1d2   : > { %444 = vst.msk [vmem:[%s291_s23] sm:$0x1] %vm443_vm8, %v438_v4  ;;  %v448_v5 = vrot.slane %v438_v4, 7 }
 0x1d4   : > { %451 = vrot.lane.b32.xlu2 %v448_v5, %s606_s25 }
 0x1d9   : > { %v440_v6 = vpop.f32.mrf.mxu2 }
 0x1da   : > { %v449_v7 = vrot.slane %v440_v6, 7  ;;  %463 = vrot.lane.b32.xlu0 %v440_v6, %s606_s25 }
 0x1dc   : > { %v450_v8 = vsel %vm447_vm9, %v448_v5, %v449_v7 }
 0x1dd   : > { %453 = vrot.lane.b32.xlu2 %v450_v8, %s606_s25 }
 0x22e   : > { %v452_v9 = vpop.permute.xlu2 %451 }
 0x22f   : > { %v457_v10 = vadd.f32 %v452_v9, %v438_v4 }
 0x231   : > { %460 = vst.msk [vmem:[%s291_s23] sm:$0xfe] %vm459_vm10, %v457_v10 }
 0x237   : > { %v454_v11 = vpop.permute.xlu2 %453 }
 0x238   : > { %v458_v12 = vadd.f32 %v454_v11, %v440_v6 }
 0x23a   : > { %462 = vst.msk [vmem:[%s291_s23 + $0x8] sm:$0x3] %vm461_vm11, %v458_v12 }
 0x24c   : > { %v464_v13 = vpop.permute.xlu0 %463 }
 0x24d   : > { %467 = vst.msk [vmem:[%s291_s23 + $0x9] sm:$0x2] %vm466_vm12, %v464_v13 }
 0x24e PF: > { %s18_s24 = sadd.s32 1, %s604_s24  }
 0x24f   : > { %p15_p4 = scmp.ge.s32.totalorder %s18_s24, 10  }
 0x251   :  { %17 = sbr.rel (!%p15_p4) target bundleno = 1 (0x1), region = 86 }

</bundles_post_ra>
